<compile_context>
chip_gen: v7x
topology: tpu7x:2x2x1
jax: 0.10.0
libtpu: 0.0.40
codegen_flags: <defaults>
</compile_context>

<pallas_src>
import functools

import jax
import jax.numpy as jnp
from jax import lax
from jax.experimental import pallas as pl
from jax.experimental.pallas import tpu as pltpu

KH, KW = 5, 3          # kernel_size=(5, 3)
SH, SW = 2, 1          # stride=(2, 1)
PH, PW = 2, 1          # padding=(2, 1)
BN_EPS = 1e-5

# Fits the 64 MiB v7x part while raising the 32 MiB scoped default for larger planes
# on v5e/v6e (128 MiB physical).
_VMEM_LIMIT = 64 * 1024 * 1024


def _conv_stats_kernel(w_ref, xr_ref, conv_ref, sum_ref, ssq_ref,
                       xep_ref, xop_ref, *, Hh, W):
    """Conv(5x3, stride (2,1), pad (2,1), no bias) + partial BN statistics.

    w_ref   : SMEM (5, 3)         conv weights
    xr_ref  : VMEM (1, Hh, 2W)    row m = [x[2m, :] | x[2m+1, :]]   (Hh == Ho)
    conv_ref: VMEM (1, Ho, W)     conv output (pre-BN)
    sum_ref : VMEM (1, Ho, 1)     per-output-row sums        (partial BN stats)
    ssq_ref : VMEM (1, Ho, 1)     per-output-row sum-of-squares
    xep_ref : VMEM (Ho+2, W+2)    scratch: zero-bordered even input rows
    xop_ref : VMEM (Ho+2, W+2)    scratch: zero-bordered odd  input rows
    """
    Ho = Hh

    # Stage the two stride-2 halves into zero-bordered scratch planes.  The border
    # realises the conv zero padding; every tap below is then a contiguous static
    # slice (plain vector loads, no HBM traffic, no relayout of unpadded data).
    xep_ref[...] = jnp.zeros((Ho + 2, W + 2), jnp.float32)
    xop_ref[...] = jnp.zeros((Ho + 2, W + 2), jnp.float32)
    xep_ref[1:Ho + 1, 1:W + 1] = xr_ref[0, :, 0:W].astype(jnp.float32)
    xop_ref[1:Ho + 1, 1:W + 1] = xr_ref[0, :, W:2 * W].astype(jnp.float32)
    xep = xep_ref[...]
    xop = xop_ref[...]

    # out[i, j] = sum_{kh,kw} w[kh, kw] * xpad[2*i + kh, j + kw]
    #   even kh -> even padded rows (xep[i + kh//2]),
    #   odd  kh -> odd  padded rows (xop[i + kh//2]).
    # Seed the accumulator with the first tap (no zeros+add pass).  The conv bias is
    # intentionally dropped: it is cancelled exactly by the BN mean subtraction.
    acc = w_ref[0, 0] * xep[0:Ho, 0:W]
    for kw in range(1, KW):                        # kh = 0
        acc = acc + w_ref[0, kw] * xep[0:Ho, kw:kw + W]
    for m in range(1, 3):                          # kh = 2, 4
        for kw in range(KW):
            acc = acc + w_ref[2 * m, kw] * xep[m:m + Ho, kw:kw + W]
    for m in range(2):                             # kh = 1, 3
        for kw in range(KW):
            acc = acc + w_ref[2 * m + 1, kw] * xop[m:m + Ho, kw:kw + W]

    conv_ref[0] = acc.astype(conv_ref.dtype)
    # Hierarchical f32 partial statistics; reduced across rows/batch in the wrapper.
    sum_ref[0] = jnp.sum(acc, axis=1, keepdims=True)
    ssq_ref[0] = jnp.sum(acc * acc, axis=1, keepdims=True)


def _bn_relu_kernel(ab_ref, y_ref, o_ref):
    """Fused BatchNorm (pre-folded scale/shift) + ReLU, single elementwise pass."""
    o_ref[...] = jnp.maximum(y_ref[...] * ab_ref[0] + ab_ref[1], 0.0).astype(o_ref.dtype)


def cbr_pallas(x, w, bias, gamma, beta, *, out_dtype=jnp.float32):
    """One CBR block: (B, H, W) float -> (B, ceil(H/2), W) out_dtype."""
    del bias  # exactly cancelled by the training-mode BatchNorm mean subtraction
    B, H, W = x.shape
    if H % 2:
        # Odd H: one explicit zero row so rows pair up (rare edge case).
        x = jnp.pad(x, ((0, 0), (0, 1), (0, 0)))
        H += 1
    Hh = H // 2
    Ho = Hh                      # output height for kernel 5 / stride 2 / pad 2
    # Free row-major bitcast (no HBM pass): row m of xr = [x[2m, :] | x[2m+1, :]].
    xr = x.reshape(B, Hh, 2 * W)

    conv, psum, pssq = pl.pallas_call(
        functools.partial(_conv_stats_kernel, Hh=Hh, W=W),
        grid=(B,),
        in_specs=[
            pl.BlockSpec(memory_space=pltpu.MemorySpace.SMEM),      # w (5, 3)
            pl.BlockSpec((1, Hh, 2 * W), lambda b: (b, 0, 0)),      # xr
        ],
        out_specs=[
            pl.BlockSpec((1, Ho, W), lambda b: (b, 0, 0)),          # conv output
            pl.BlockSpec((1, Ho, 1), lambda b: (b, 0, 0)),          # partial sums
            pl.BlockSpec((1, Ho, 1), lambda b: (b, 0, 0)),          # partial sumsq
        ],
        out_shape=[
            jax.ShapeDtypeStruct((B, Ho, W), jnp.float32),
            jax.ShapeDtypeStruct((B, Ho, 1), jnp.float32),
            jax.ShapeDtypeStruct((B, Ho, 1), jnp.float32),
        ],
        scratch_shapes=[
            pltpu.VMEM((Ho + 2, W + 2), jnp.float32),
            pltpu.VMEM((Ho + 2, W + 2), jnp.float32),
        ],
        compiler_params=pltpu.CompilerParams(
            dimension_semantics=("parallel",),
            vmem_limit_bytes=_VMEM_LIMIT,
        ),
    )(w.astype(jnp.float32), xr)

    # Fold the batch statistics into one scale/shift pair (tiny scalar math).
    n = jnp.float32(B * Ho * W)
    mean = jnp.sum(psum) / n
    var = jnp.maximum(jnp.sum(pssq) / n - mean * mean, 0.0)
    scale = (gamma * lax.rsqrt(var + BN_EPS)).astype(jnp.float32)
    shift = (beta - mean * scale).astype(jnp.float32)
    ab = jnp.stack([scale, shift])

    # Pass 2: fused normalize + ReLU on a lane-dense (B, 1, Ho*W) view
    # (reshape between the calls is a free bitcast on the HBM buffer).
    yflat = conv.reshape(B, 1, Ho * W)
    out = pl.pallas_call(
        _bn_relu_kernel,
        grid=(B,),
        in_specs=[
            pl.BlockSpec(memory_space=pltpu.MemorySpace.SMEM),      # [scale, shift]
            pl.BlockSpec((1, 1, Ho * W), lambda b: (b, 0, 0)),
        ],
        out_specs=pl.BlockSpec((1, 1, Ho * W), lambda b: (b, 0, 0)),
        out_shape=jax.ShapeDtypeStruct((B, 1, Ho * W), out_dtype),
        compiler_params=pltpu.CompilerParams(
            dimension_semantics=("parallel",),
            vmem_limit_bytes=_VMEM_LIMIT,
        ),
    )(ab, yflat)
    return out.reshape(B, Ho, W)


def cnn_feature_extractor(x, params, interlayer_dtype=jnp.float32):
    """Mirrors CNNFeatureExtractor.forward (including the squeeze/unsqueeze dance).

    `interlayer_dtype=jnp.bfloat16` halves inter-layer HBM traffic for depth>1 stacks
    on v6e/v7x (validate with a looser tolerance); the final layer stays float32.
    """
    depth = len(params)
    for i, (w, b, gamma, beta) in enumerate(params):
        dt = jnp.float32 if i == depth - 1 else interlayer_dtype
        x = cbr_pallas(x, w, b, gamma, beta, out_dtype=dt)
        x = jnp.squeeze(x)              # torch .squeeze()
        if x.ndim < 3:
            x = x[None]                 # torch .unsqueeze(0)
    return x


# ----------------------------- pure-JAX reference -----------------------------
def _cbr_ref(x, w, b, gamma, beta):
    xn = x[:, None, :, :]                                        # NCHW, C=1
    out = lax.conv_general_dilated(
        xn, w[None, None, :, :], (SH, SW), ((PH, PH), (PW, PW)),
        dimension_numbers=("NCHW", "OIHW", "NCHW"))
    out = out + b
    mean = out.mean()
    var = ((out - mean) ** 2).mean()
    y = (out - mean) / jnp.sqrt(var + BN_EPS) * gamma + beta
    return jnp.squeeze(jnp.maximum(y, 0.0), axis=1)


if __name__ == "__main__":
    key = jax.random.PRNGKey(0)
    kx, kwkey = jax.random.split(key)

    B, H, W = 2, 16, 16
    depth = 1
    x = jax.random.normal(kx, (B, H, W), jnp.float32)

    # Deterministic synthetic parameters (shapes from the module __init__):
    # conv weight (5,3), conv bias scalar; BatchNorm2d(1) defaults gamma=1, beta=0.
    params = []
    for d in range(depth):
        w = jax.random.normal(jax.random.fold_in(kwkey, d), (KH, KW), jnp.float32)
        w = w * (1.0 / (KH * KW) ** 0.5)
        b = jnp.float32(0.05 * (d + 1))
        params.append((w, b, jnp.float32(1.0), jnp.float32(0.0)))

    out = cnn_feature_extractor(x, params)
    out = jax.block_until_ready(out)

    # Cross-check against the plain-JAX reference implementation.
    ref = x
    for (w, b, gamma, beta) in params:
        ref = _cbr_ref(ref, w, b, gamma, beta)
        ref = jnp.squeeze(ref)
        if ref.ndim < 3:
            ref = ref[None]

    assert out.shape == (B, (H - 1) // SH + 1, W), out.shape
    err = float(jnp.max(jnp.abs(out - ref)))
    # The kernel drops the conv bias (cancelled exactly by the BN mean subtraction)
    # and computes var as E[x^2] - E[x]^2 from hierarchical f32 partial sums, so it
    # matches the reference to fp32 round-off rather than bit-exactly.
    assert jnp.allclose(out, ref, atol=1e-4, rtol=1e-4), err
    print("KERNEL_OK")
</pallas_src>

<mosaic_0001>
module attributes {stable_mosaic.version = 11 : i64} {
  func.func @_conv_stats_kernel(%arg0: i32, %arg1: memref<5x3xf32, #tpu.memory_space<smem>>, %arg2: memref<1x8x32xf32, #tpu.memory_space<vmem>>, %arg3: memref<1x8x16xf32, #tpu.memory_space<vmem>>, %arg4: memref<1x8x1xf32, #tpu.memory_space<vmem>>, %arg5: memref<1x8x1xf32, #tpu.memory_space<vmem>>, %arg6: memref<10x18xf32, #tpu.memory_space<vmem>>, %arg7: memref<10x18xf32, #tpu.memory_space<vmem>>) attributes {dimension_semantics = [#tpu.dimension_semantics<parallel>], iteration_bounds = array<i64: 2>, scalar_prefetch = 0 : i64, scratch_operands = 2 : i64, tpu.core_type = #tpu.core_type<tc>, window_params = [{transform_indices = @transform_0, window_bounds = array<i64: 5, 3>}, {transform_indices = @transform_1, window_bounds = array<i64: 1, 8, 32>}, {transform_indices = @transform_2, window_bounds = array<i64: 1, 8, 16>}, {transform_indices = @transform_3, window_bounds = array<i64: 1, 8, 1>}, {transform_indices = @transform_4, window_bounds = array<i64: 1, 8, 1>}]} {
    %cst = arith.constant 0.000000e+00 : f32
    %0 = vector.broadcast %cst : f32 to vector<10x18xf32>
    %c0 = arith.constant 0 : index
    %c0_0 = arith.constant 0 : index
    %1 = vector.load %arg6[%c0, %c0_0] : memref<10x18xf32, #tpu.memory_space<vmem>>, vector<10x18xf32>
    tpu.vector_store %arg6[%c0, %c0_0], %0 {strides = array<i32>} : memref<10x18xf32, #tpu.memory_space<vmem>>, vector<10x18xf32>,
    %cst_1 = arith.constant 0.000000e+00 : f32
    %2 = vector.broadcast %cst_1 : f32 to vector<10x18xf32>
    %c0_2 = arith.constant 0 : index
    %c0_3 = arith.constant 0 : index
    %3 = vector.load %arg7[%c0_2, %c0_3] : memref<10x18xf32, #tpu.memory_space<vmem>>, vector<10x18xf32>
    tpu.vector_store %arg7[%c0_2, %c0_3], %2 {strides = array<i32>} : memref<10x18xf32, #tpu.memory_space<vmem>>, vector<10x18xf32>,
    %c0_4 = arith.constant 0 : index
    %c0_5 = arith.constant 0 : index
    %c0_6 = arith.constant 0 : index
    %4 = vector.load %arg2[%c0_4, %c0_5, %c0_6] : memref<1x8x32xf32, #tpu.memory_space<vmem>>, vector<1x8x16xf32>
    %5 = vector.shape_cast %4 : vector<1x8x16xf32> to vector<8x16xf32>
    %c1 = arith.constant 1 : index
    %c1_7 = arith.constant 1 : index
    %6 = vector.load %arg6[%c1, %c1_7] : memref<10x18xf32, #tpu.memory_space<vmem>>, vector<8x16xf32>
    tpu.vector_store %arg6[%c1, %c1_7], %5 {strides = array<i32>} : memref<10x18xf32, #tpu.memory_space<vmem>>, vector<8x16xf32>,
    %c0_8 = arith.constant 0 : index
    %c0_9 = arith.constant 0 : index
    %c16 = arith.constant 16 : index
    %7 = vector.load %arg2[%c0_8, %c0_9, %c16] : memref<1x8x32xf32, #tpu.memory_space<vmem>>, vector<1x8x16xf32>
    %8 = vector.shape_cast %7 : vector<1x8x16xf32> to vector<8x16xf32>
    %c1_10 = arith.constant 1 : index
    %c1_11 = arith.constant 1 : index
    %9 = vector.load %arg7[%c1_10, %c1_11] : memref<10x18xf32, #tpu.memory_space<vmem>>, vector<8x16xf32>
    tpu.vector_store %arg7[%c1_10, %c1_11], %8 {strides = array<i32>} : memref<10x18xf32, #tpu.memory_space<vmem>>, vector<8x16xf32>,
    %c0_12 = arith.constant 0 : index
    %c0_13 = arith.constant 0 : index
    %10 = vector.load %arg6[%c0_12, %c0_13] : memref<10x18xf32, #tpu.memory_space<vmem>>, vector<10x18xf32>
    %c0_14 = arith.constant 0 : index
    %c0_15 = arith.constant 0 : index
    %11 = vector.load %arg7[%c0_14, %c0_15] : memref<10x18xf32, #tpu.memory_space<vmem>>, vector<10x18xf32>
    %c0_16 = arith.constant 0 : index
    %c0_17 = arith.constant 0 : index
    %12 = memref.load %arg1[%c0_16, %c0_17] : memref<5x3xf32, #tpu.memory_space<smem>>
    %13 = vector.extract_strided_slice %10 {offsets = [0, 0], sizes = [8, 16], strides = [1, 1]} : vector<10x18xf32> to vector<8x16xf32>
    %14 = vector.broadcast %12 : f32 to vector<8x16xf32>
    %15 = arith.mulf %14, %13 : vector<8x16xf32>
    %c0_18 = arith.constant 0 : index
    %c1_19 = arith.constant 1 : index
    %16 = memref.load %arg1[%c0_18, %c1_19] : memref<5x3xf32, #tpu.memory_space<smem>>
    %17 = vector.extract_strided_slice %10 {offsets = [0, 1], sizes = [8, 16], strides = [1, 1]} : vector<10x18xf32> to vector<8x16xf32>
    %18 = vector.broadcast %16 : f32 to vector<8x16xf32>
    %19 = arith.mulf %18, %17 : vector<8x16xf32>
    %20 = arith.addf %15, %19 : vector<8x16xf32>
    %c0_20 = arith.constant 0 : index
    %c2 = arith.constant 2 : index
    %21 = memref.load %arg1[%c0_20, %c2] : memref<5x3xf32, #tpu.memory_space<smem>>
    %22 = vector.extract_strided_slice %10 {offsets = [0, 2], sizes = [8, 16], strides = [1, 1]} : vector<10x18xf32> to vector<8x16xf32>
    %23 = vector.broadcast %21 : f32 to vector<8x16xf32>
    %24 = arith.mulf %23, %22 : vector<8x16xf32>
    %25 = arith.addf %20, %24 : vector<8x16xf32>
    %c2_21 = arith.constant 2 : index
    %c0_22 = arith.constant 0 : index
    %26 = memref.load %arg1[%c2_21, %c0_22] : memref<5x3xf32, #tpu.memory_space<smem>>
    %27 = vector.extract_strided_slice %10 {offsets = [1, 0], sizes = [8, 16], strides = [1, 1]} : vector<10x18xf32> to vector<8x16xf32>
    %28 = vector.broadcast %26 : f32 to vector<8x16xf32>
    %29 = arith.mulf %28, %27 : vector<8x16xf32>
    %30 = arith.addf %25, %29 : vector<8x16xf32>
    %c2_23 = arith.constant 2 : index
    %c1_24 = arith.constant 1 : index
    %31 = memref.load %arg1[%c2_23, %c1_24] : memref<5x3xf32, #tpu.memory_space<smem>>
    %32 = vector.extract_strided_slice %10 {offsets = [1, 1], sizes = [8, 16], strides = [1, 1]} : vector<10x18xf32> to vector<8x16xf32>
    %33 = vector.broadcast %31 : f32 to vector<8x16xf32>
    %34 = arith.mulf %33, %32 : vector<8x16xf32>
    %35 = arith.addf %30, %34 : vector<8x16xf32>
    %c2_25 = arith.constant 2 : index
    %c2_26 = arith.constant 2 : index
    %36 = memref.load %arg1[%c2_25, %c2_26] : memref<5x3xf32, #tpu.memory_space<smem>>
    %37 = vector.extract_strided_slice %10 {offsets = [1, 2], sizes = [8, 16], strides = [1, 1]} : vector<10x18xf32> to vector<8x16xf32>
    %38 = vector.broadcast %36 : f32 to vector<8x16xf32>
    %39 = arith.mulf %38, %37 : vector<8x16xf32>
    %40 = arith.addf %35, %39 : vector<8x16xf32>
    %c4 = arith.constant 4 : index
    %c0_27 = arith.constant 0 : index
    %41 = memref.load %arg1[%c4, %c0_27] : memref<5x3xf32, #tpu.memory_space<smem>>
    %42 = vector.extract_strided_slice %10 {offsets = [2, 0], sizes = [8, 16], strides = [1, 1]} : vector<10x18xf32> to vector<8x16xf32>
    %43 = vector.broadcast %41 : f32 to vector<8x16xf32>
    %44 = arith.mulf %43, %42 : vector<8x16xf32>
    %45 = arith.addf %40, %44 : vector<8x16xf32>
    %c4_28 = arith.constant 4 : index
    %c1_29 = arith.constant 1 : index
    %46 = memref.load %arg1[%c4_28, %c1_29] : memref<5x3xf32, #tpu.memory_space<smem>>
    %47 = vector.extract_strided_slice %10 {offsets = [2, 1], sizes = [8, 16], strides = [1, 1]} : vector<10x18xf32> to vector<8x16xf32>
    %48 = vector.broadcast %46 : f32 to vector<8x16xf32>
    %49 = arith.mulf %48, %47 : vector<8x16xf32>
    %50 = arith.addf %45, %49 : vector<8x16xf32>
    %c4_30 = arith.constant 4 : index
    %c2_31 = arith.constant 2 : index
    %51 = memref.load %arg1[%c4_30, %c2_31] : memref<5x3xf32, #tpu.memory_space<smem>>
    %52 = vector.extract_strided_slice %10 {offsets = [2, 2], sizes = [8, 16], strides = [1, 1]} : vector<10x18xf32> to vector<8x16xf32>
    %53 = vector.broadcast %51 : f32 to vector<8x16xf32>
    %54 = arith.mulf %53, %52 : vector<8x16xf32>
    %55 = arith.addf %50, %54 : vector<8x16xf32>
    %c1_32 = arith.constant 1 : index
    %c0_33 = arith.constant 0 : index
    %56 = memref.load %arg1[%c1_32, %c0_33] : memref<5x3xf32, #tpu.memory_space<smem>>
    %57 = vector.extract_strided_slice %11 {offsets = [0, 0], sizes = [8, 16], strides = [1, 1]} : vector<10x18xf32> to vector<8x16xf32>
    %58 = vector.broadcast %56 : f32 to vector<8x16xf32>
    %59 = arith.mulf %58, %57 : vector<8x16xf32>
    %60 = arith.addf %55, %59 : vector<8x16xf32>
    %c1_34 = arith.constant 1 : index
    %c1_35 = arith.constant 1 : index
    %61 = memref.load %arg1[%c1_34, %c1_35] : memref<5x3xf32, #tpu.memory_space<smem>>
    %62 = vector.extract_strided_slice %11 {offsets = [0, 1], sizes = [8, 16], strides = [1, 1]} : vector<10x18xf32> to vector<8x16xf32>
    %63 = vector.broadcast %61 : f32 to vector<8x16xf32>
    %64 = arith.mulf %63, %62 : vector<8x16xf32>
    %65 = arith.addf %60, %64 : vector<8x16xf32>
    %c1_36 = arith.constant 1 : index
    %c2_37 = arith.constant 2 : index
    %66 = memref.load %arg1[%c1_36, %c2_37] : memref<5x3xf32, #tpu.memory_space<smem>>
    %67 = vector.extract_strided_slice %11 {offsets = [0, 2], sizes = [8, 16], strides = [1, 1]} : vector<10x18xf32> to vector<8x16xf32>
    %68 = vector.broadcast %66 : f32 to vector<8x16xf32>
    %69 = arith.mulf %68, %67 : vector<8x16xf32>
    %70 = arith.addf %65, %69 : vector<8x16xf32>
    %c3 = arith.constant 3 : index
    %c0_38 = arith.constant 0 : index
    %71 = memref.load %arg1[%c3, %c0_38] : memref<5x3xf32, #tpu.memory_space<smem>>
    %72 = vector.extract_strided_slice %11 {offsets = [1, 0], sizes = [8, 16], strides = [1, 1]} : vector<10x18xf32> to vector<8x16xf32>
    %73 = vector.broadcast %71 : f32 to vector<8x16xf32>
    %74 = arith.mulf %73, %72 : vector<8x16xf32>
    %75 = arith.addf %70, %74 : vector<8x16xf32>
    %c3_39 = arith.constant 3 : index
    %c1_40 = arith.constant 1 : index
    %76 = memref.load %arg1[%c3_39, %c1_40] : memref<5x3xf32, #tpu.memory_space<smem>>
    %77 = vector.extract_strided_slice %11 {offsets = [1, 1], sizes = [8, 16], strides = [1, 1]} : vector<10x18xf32> to vector<8x16xf32>
    %78 = vector.broadcast %76 : f32 to vector<8x16xf32>
    %79 = arith.mulf %78, %77 : vector<8x16xf32>
    %80 = arith.addf %75, %79 : vector<8x16xf32>
    %c3_41 = arith.constant 3 : index
    %c2_42 = arith.constant 2 : index
    %81 = memref.load %arg1[%c3_41, %c2_42] : memref<5x3xf32, #tpu.memory_space<smem>>
    %82 = vector.extract_strided_slice %11 {offsets = [1, 2], sizes = [8, 16], strides = [1, 1]} : vector<10x18xf32> to vector<8x16xf32>
    %83 = vector.broadcast %81 : f32 to vector<8x16xf32>
    %84 = arith.mulf %83, %82 : vector<8x16xf32>
    %85 = arith.addf %80, %84 : vector<8x16xf32>
    %c0_43 = arith.constant 0 : index
    %c0_44 = arith.constant 0 : index
    %c0_45 = arith.constant 0 : index
    %86 = vector.load %arg3[%c0_43, %c0_44, %c0_45] : memref<1x8x16xf32, #tpu.memory_space<vmem>>, vector<1x8x16xf32>
    %87 = vector.shape_cast %86 : vector<1x8x16xf32> to vector<8x16xf32>
    %88 = vector.shape_cast %85 : vector<8x16xf32> to vector<1x8x16xf32>
    tpu.vector_store %arg3[%c0_43, %c0_44, %c0_45], %88 {strides = array<i32>} : memref<1x8x16xf32, #tpu.memory_space<vmem>>, vector<1x8x16xf32>,
    %cst_46 = arith.constant dense<0.000000e+00> : vector<8xf32>
    %89 = vector.multi_reduction <add>, %85, %cst_46 [1] : vector<8x16xf32> to vector<8xf32>
    %90 = vector.shape_cast %89 : vector<8xf32> to vector<8x1xf32>
    %c0_47 = arith.constant 0 : index
    %c0_48 = arith.constant 0 : index
    %c0_49 = arith.constant 0 : index
    %91 = vector.load %arg4[%c0_47, %c0_48, %c0_49] : memref<1x8x1xf32, #tpu.memory_space<vmem>>, vector<1x8x1xf32>
    %92 = vector.shape_cast %91 : vector<1x8x1xf32> to vector<8x1xf32>
    %93 = vector.shape_cast %90 : vector<8x1xf32> to vector<1x8x1xf32>
    tpu.vector_store %arg4[%c0_47, %c0_48, %c0_49], %93 {strides = array<i32>} : memref<1x8x1xf32, #tpu.memory_space<vmem>>, vector<1x8x1xf32>,
    %94 = arith.mulf %85, %85 : vector<8x16xf32>
    %cst_50 = arith.constant dense<0.000000e+00> : vector<8xf32>
    %95 = vector.multi_reduction <add>, %94, %cst_50 [1] : vector<8x16xf32> to vector<8xf32>
    %96 = vector.shape_cast %95 : vector<8xf32> to vector<8x1xf32>
    %c0_51 = arith.constant 0 : index
    %c0_52 = arith.constant 0 : index
    %c0_53 = arith.constant 0 : index
    %97 = vector.load %arg5[%c0_51, %c0_52, %c0_53] : memref<1x8x1xf32, #tpu.memory_space<vmem>>, vector<1x8x1xf32>
    %98 = vector.shape_cast %97 : vector<1x8x1xf32> to vector<8x1xf32>
    %99 = vector.shape_cast %96 : vector<8x1xf32> to vector<1x8x1xf32>
    tpu.vector_store %arg5[%c0_51, %c0_52, %c0_53], %99 {strides = array<i32>} : memref<1x8x1xf32, #tpu.memory_space<vmem>>, vector<1x8x1xf32>,
    return
  }
  func.func @transform_0(%arg0: i32) -> (i32, i32) {
    %c0_i32 = arith.constant 0 : i32
    %c0_i32_0 = arith.constant 0 : i32
    %c0_i32_1 = arith.constant 0 : i32
    return %c0_i32, %c0_i32_0 : i32, i32
  }
  func.func @transform_1(%arg0: i32) -> (i32, i32, i32) {
    %c0_i32 = arith.constant 0 : i32
    %c0_i32_0 = arith.constant 0 : i32
    %c0_i32_1 = arith.constant 0 : i32
    return %arg0, %c0_i32, %c0_i32_0 : i32, i32, i32
  }
  func.func @transform_2(%arg0: i32) -> (i32, i32, i32) {
    %c0_i32 = arith.constant 0 : i32
    %c0_i32_0 = arith.constant 0 : i32
    %c0_i32_1 = arith.constant 0 : i32
    return %arg0, %c0_i32, %c0_i32_0 : i32, i32, i32
  }
  func.func @transform_3(%arg0: i32) -> (i32, i32, i32) {
    %c0_i32 = arith.constant 0 : i32
    %c0_i32_0 = arith.constant 0 : i32
    %c0_i32_1 = arith.constant 0 : i32
    return %arg0, %c0_i32, %c0_i32_0 : i32, i32, i32
  }
  func.func @transform_4(%arg0: i32) -> (i32, i32, i32) {
    %c0_i32 = arith.constant 0 : i32
    %c0_i32_0 = arith.constant 0 : i32
    %c0_i32_1 = arith.constant 0 : i32
    return %arg0, %c0_i32, %c0_i32_0 : i32, i32, i32
  }
}

</mosaic_0001>

<bundles_post_ra>
// kernel: tpu_custom_call.1
= control target key start
LH: loop header
LB: loop body
LE: loop exit
PB: predicated region body
PF: predicated region fallthrough
CT: control target
= control target key end

     0   :  { %10 = vsyncpa [#allocation7], 0  ;;  %s1285_s0 = inlined_call_operand.hbm [shape: f32[5,3], index: 0, kind: input, shape index: {}]   ;;  %s1286_s1 = inlined_call_operand.hbm [shape: f32[2,8,32], index: 1, kind: input, shape index: {}]   ;;  %s1287_s2 = inlined_call_operand.hbm [shape: f32[2,8,16], index: 2, kind: output, shape index: {0}]   ;;  %s1288_s3 = inlined_call_operand.hbm [shape: f32[2,8,1], index: 3, kind: output, shape index: {1}]   ;;  %s1289_s4 = inlined_call_operand.hbm [shape: f32[2,8,1], index: 4, kind: output, shape index: {2}]  }
   0x1   :  { %11 = vsyncpa [#allocation5], 0 }
   0x2   :  { %13 = vsyncpa [#allocation5 + $0x1], 0 }
   0x3   :  { %14 = vsyncpa [#allocation6], 0 }
   0x4   :  { %16 = vsyncpa [#allocation6 + $0x1], 0 }
   0x5   :  { %17 = vsyncpa [#allocation11], 0 }
   0x6   :  { %19 = vsyncpa [#allocation11 + $0x1], 0  ;;  %s939_s15 = smov 0   ;;  %s941_s16 = smov 0  }
   0x7   :  { %s943_s17 = smov 0   ;;  %s945_s18 = smov 0  }
   0x8 LB: > { %s960_s19 = sadd.s32 4294967295, %s902_s18   ;;  %s623_s20 = sadd.s32 4294967294, %s902_s18   ;;  %s902_s18 = sphi %s945_s18, %s1310_s18   ;;  %s898_s17 = sphi %s943_s17, %s1309_s17   ;;  %s894_s16 = sphi %s941_s16, %s1308_s16   ;;  %s890_s15 = sphi %s939_s15, %s1307_s15  }
   0x9   : > { %p66_p0 = scmp.ne.s32.totalorder %s894_s16, %s890_s15  ;;  %p1290_p1 = scmp.eq.s32.totalorder %s960_s19, 0 }
   0xa   : > { %p96_p3 = scmp.eq.s32.totalorder %s623_s20, 1  ;;  %p624_p5 = scmp.ge.s32.totalorder %s902_s18, 1 }
   0xb   : > { %p971_p4 = por %p1290_p1, %p66_p0  ;;  %p155_p7 = scmp.lt.s32.totalorder %s902_s18, 3 }
   0xc   : > { %p976_p6 = por %p96_p3, %p66_p0  ;;  %s987_s24 = sadd.s32 1, %s902_s18  }
   0xd   : > { %s1293_s21 = scalar_select %p971_p4, 1, 0 }
   0xe   : > { %s1294_s22 = scalar_select %p976_p6, 1, 0 }
   0xf   : > { %p981_p8 = pnand %p624_p5, %p155_p7  ;;  %s50_s25 = ssub.s32 %s902_s18, %s987_s24 }
  0x10   : > { %s53_s26 = sadd.s32 1, %s898_s17  ;;  %p1000_p12 = scmp.eq.s32.totalorder %s50_s25, 0 }
  0x11   : > { %p669_p10 = pneg %p981_p8  ;;  %p60_p13 = scmp.ne.s32.totalorder %s898_s17, %s894_s16 }
  0x12   : > { %p61_p0 = scmp.eq.s32.totalorder %s902_s18, 0  ;;  %p688_p3 = scmp.lt.s32.totalorder %s902_s18, 2 }
  0x13   : > { %p996_p11 = pnand %p669_p10, %p1290_p1  ;;  %s729_s5 = scalar_lea.hbm %s1285_s0, 128 }
  0x14   : > { %p730_p5 = scmp.ne.s32.totalorder %s1285_s0, %s729_s5  ;;  %p736_p1 = scmp.lt.u32.totalorder %s729_s5, %s1285_s0 }
  0x15   : > { %p731_p7 = pneg %p996_p11 }
  0x17   : > { %p732_p10 = pnand %p731_p7, %p730_p5 }
  0x19   : > { %p733_p9 = pneg %p732_p10 }
  0x1b   : > { %p738_p2 = pnand %p736_p1, %p733_p9 }
  0x1d   : > { %741 = shalt.err (!%p738_p2)
}
  0x1e   : > { %s904_s10 = smov [#allocation4]   ;;  %p62_p1 = por %p61_p0, %p60_p13 }
  0x1f   : > { %672 = dma.hbm_to_smem (!%p996_p11), %s1285_s0, 128, %s904_s10, [#allocation7]  }
  0x20   : > { %s1027_s13 = scalar_select %p1000_p12, %s898_s17, %s53_s26  }
  0x21   : > { %p1298_p2 = scmp.eq.s32.totalorder %s960_s19, 1  ;;  %s177_s25 = sand.u32 1, %s898_s17  }
  0x22   : > { %s628_s27 = sshll.u32 %s902_s18, 7  ;;  %s627_s29 = sshll.u32 %s177_s25, 3 }
  0x23   : > { %p1039_p9 = por %p1298_p2, %p60_p13  ;;  %s1048_s6 = scalar_lea.hbm %s1286_s1, %s628_s27 }
  0x24   : > { %s181_s26 = scalar_lea.vmem [#allocation8], %s627_s29  ;;  %p1052_p11 = pnand %p688_p3, %p62_p1 }
  0x25   : > { %s1299_s14 = scalar_select %p1039_p9, 1, 0 }
  0x26   : > { %s188_s28 = sshll.u32 %s181_s26, 4  ;;  %s178_s8 = scalar_lea.sflag [#allocation5], %s177_s25  ;;  %s1056_s28 = int_to_ptr.vmem [resolvable:$true] %s188_s28 }
  0x27   : > { %s742_s9 = scalar_lea.hbm %s1048_s6, 128  ;;  %p744_p13 = pneg %p1052_p11 }
  0x28   : > { %p743_p12 = scmp.ne.s32.totalorder %s1048_s6, %s742_s9  ;;  %s747_s12 = scalar_lea.hbm %s1286_s1, 256 }
  0x29   : > { %p748_p3 = scmp.lt.u32.totalorder %s1048_s6, %s1286_s1  ;;  %p749_p7 = scmp.lt.u32.totalorder %s747_s12, %s742_s9 }
  0x2a   : > { %p745_p0 = pnand %p744_p13, %p743_p12  ;;  %p751_p1 = scmp.lt.u32.totalorder %s742_s9, %s1048_s6 }
  0x2b   : > { %p750_p10 = por %p749_p7, %p748_p3 }
  0x2c   : > { %p746_p5 = pneg %p745_p0 }
  0x2d   : > { %p752_p2 = por %p751_p1, %p750_p10 }
  0x2f   : > { %p753_p6 = pnand %p752_p2, %p746_p5 }
  0x31   : > { %756 = shalt.err (!%p753_p6)
}
  0x32   : > { %s757_s25 = scalar_lea.vmem %s1056_s28, 128  ;;  %s905_s30 = smov [#allocation8]  }
  0x33   : > { %p758_p12 = scmp.ne.s32.totalorder %s1056_s28, %s757_s25  ;;  %s762_s5 = sshll.u32 %s905_s30, 4  ;;  %s763_s5 = int_to_ptr.vmem [resolvable:$false] %s762_s5 }
  0x34   : > { %s764_s26 = scalar_lea.vmem %s763_s5, 256  ;;  %p765_p4 = scmp.lt.s32.totalorder %s1056_s28, %s763_s5 }
  0x35   : > { %p760_p0 = pnand %p758_p12, %p744_p13  ;;  %p766_p3 = scmp.lt.s32.totalorder %s764_s26, %s757_s25 }
  0x37   : > { %p761_p9 = pneg %p760_p0  ;;  %p767_p7 = por %p766_p3, %p765_p4 }
  0x39   : > { %p768_p10 = pnand %p767_p7, %p761_p9 }
  0x3b   : > { %771 = shalt.err (!%p768_p10)
}
  0x3c   : > { %676 = dma.hbm_to_vmem [thread:$0]  (!%p1052_p11), %s1048_s6, 128, %s1056_s28, %s178_s8  }
  0x3d   : > { %197 = sbr.rel (%p981_p8) target bundleno = 526 (0x20e), region = 28  ;;  %p1301_p6 = scmp.eq.s32.totalorder (!%p981_p8), %s960_s19, 0 }
  0x44   : > { %873 = dma.done.wait (%p1301_p6), [#allocation7], 128   ;;  %p1302_p13 = pmov %p1301_p6 }
  0x45   : > { %s1090_s9 = sand.u32 1, %s894_s16   ;;  %p1303_p4 = scmp.ne.s32.totalorder %s1293_s21, 0 }
  0x46   : > { %875 = vsyncadd (%p1302_p13), [#allocation7], 4294967168  ;;  %s1093_s10 = sshll.u32 %s1090_s9, 3  ;;  %s204_s7 = scalar_lea.sflag [#allocation5], %s1090_s9 }
  0x47   : > { %s207_s6 = scalar_lea.vmem [#allocation8], %s1093_s10 }
  0x48   : > { %877 = dma.done.wait (%p1303_p4), %s204_s7, 128  }
  0x49   : > { %879 = vsyncadd (%p1303_p4), %s204_s7, 4294967168 }
  0x4a   : > { %212 = sfence }
  0x4b   : > { %v249_v0 = vld [vmem:[%s207_s6] sm:$0xff]  ;;  %vm243_vm0 = vcmask 146432   ;;  %s906_s23 = smov 1   ;;  %v907_v1 = vmov 0.0   ;;  %vm245_vm1 = vcmask 140288   ;;  %s908_s28 = smov 113  }
  0x4c   : > { %251 = vrot.lane.b32.xlu0 %v249_v0, %s906_s23  ;;  %244 = vst.msk [vmem:[#allocation2] sm:$0xff] %vm243_vm0, %v907_v1  ;;  %247 = vst.msk [vmem:[#allocation3] sm:$0xff] %vm243_vm0, %v907_v1  ;;  %vm254_vm2 = vcmask 138248   ;;  %s635_s8 = sld [smem:[#allocation4 + $0x1]]  ;;  %s639_s27 = sld [smem:[#allocation4 + $0x102]]  ;;  %vm291_vm3 = vcmask 1046528  }
  0x4d   : > { %246 = vst.msk [vmem:[#allocation2 + $0x8] sm:$0x3] %vm245_vm1, %v907_v1  ;;  %248 = vst.msk [vmem:[#allocation3 + $0x8] sm:$0x3] %vm245_vm1, %v907_v1  ;;  %s638_s11 = sld [smem:[#allocation4 + $0x101]]  ;;  %s1101_s21 = sld [smem:[#allocation4 + $0x2]] }
  0x4e   : > { %s641_s12 = sld [smem:[#allocation4 + $0x201]]  ;;  %s1103_s29 = sld [smem:[#allocation4 + $0x202]]  ;;  %vm329_vm4 = vcmask 1045504   ;;  %vm418_vm5 = vcmask 130048  }
  0x4f   : > { %s1105_s25 = sld [smem:[#allocation4 + $0x181]]  ;;  %s1107_s30 = sld [smem:[#allocation4 + $0x100]] }
  0x50   : > { %258 = vrot.lane.b32.xlu0 %v249_v0, %s908_s28  ;;  %s1109_s5 = sld [smem:[#allocation4 + $0x200]]  ;;  %s1111_s26 = sld [smem:[#allocation4 + $0x81]] }
  0x51   : > { %s1113_s7 = sld [smem:[#allocation4 + $0x82]]  ;;  %s1117_s23 = sld [smem:[#allocation4 + $0x180]] }
  0x52   : > { %v270_v4 = vstv %s635_s8  ;;  %v311_v7 = vstv %s639_s27  ;;  %s1115_s6 = sld [smem:[#allocation4 + $0x182]]  ;;  %s909_s28 = smov 127  }
  0x53   : > { %v298_v5 = vstv %s638_s11  ;;  %v278_v10 = vstv %s1101_s21  ;;  %s910_s8 = smov 126   ;;  %s266_s11 = sld [smem:[#allocation4]] }
  0x54   : > { %v336_v6 = vstv %s641_s12  ;;  %v349_v14 = vstv %s1103_s29  ;;  %s643_s12 = sld [smem:[#allocation4 + $0x80]]  ;;  %s228_s27 = scalar_lea.vmem [#allocation9], %s1093_s10 }
  0x55   : > { %v393_v21 = vstv %s1105_s25  ;;  %v286_v22 = vstv %s1107_s30  ;;  %s1168_s21 = sshll.u32 %s960_s19, 7  ;;  %p1304_p9 = scmp.ne.s32.totalorder %s1299_s14, 0 }
  0x56   : > { %v366_v33 = vstv %s1111_s26  ;;  %v324_v35 = vstv %s1109_s5  ;;  %s1174_s30 = scalar_lea.hbm %s1287_s2, %s1168_s21  ;;  %s454_s5 = sshll.u32 %s228_s27, 4  ;;  %s455_s5 = int_to_ptr.vmem [resolvable:$true] %s454_s5 }
  0x57   : > { %v374_v34 = vstv %s1113_s7  ;;  %v382_v39 = vstv %s1117_s23  ;;  %s431_s26 = scalar_lea.sflag [#allocation6], %s1090_s9  ;;  %s772_s7 = scalar_lea.vmem %s455_s5, 128 }
  0x58   : > { %v406_v38 = vstv %s1115_s6  ;;  %p773_p8 = scmp.ne.s32.totalorder %s455_s5, %s772_s7  ;;  %s911_s6 = smov [#allocation9]  }
  0x59   : > { %s776_s23 = sshll.u32 %s911_s6, 4  ;;  %s777_s23 = int_to_ptr.vmem [resolvable:$false] %s776_s23 }
  0x5a   : > { %p774_p11 = pnand %p773_p8, %p1304_p9  ;;  %p779_p1 = scmp.lt.s32.totalorder %s455_s5, %s777_s23 }
  0x5c   : > { %p775_p5 = pneg %p774_p11 }
  0xbe   : > { %v252_v2 = vpop.permute.xlu0 %251 }
  0xbf   : > { %255 = vst.msk [vmem:[#allocation2 + $0x1] sm:$0xff] %vm254_vm2, %v252_v2 }
  0xc2   : > { %v259_v3 = vpop.permute.xlu0 %258 }
  0xc3   : > { %261 = vst.msk [vmem:[#allocation3 + $0x1] sm:$0xff] %vm254_vm2, %v259_v3 }
  0xc6   : > { %v1119_v8 = vld [vmem:[#allocation2] sm:$0xff]  ;;  %v263_v9 = vld [vmem:[#allocation2 + $0x8] sm:$0x3] }
  0xc7   : > { %v271_v11 = vmul.f32 %v270_v4, %v1119_v8  ;;  %v299_v12 = vmul.f32 %v298_v5, %v1119_v8  ;;  %v300_v13 = vmul.f32 %v298_v5, %v263_v9  ;;  %v337_v15 = vmul.f32 %v336_v6, %v1119_v8 }
  0xc8   : > { %v338_v16 = vmul.f32 %v336_v6, %v263_v9  ;;  %v312_v17 = vmul.f32 %v311_v7, %v1119_v8  ;;  %v313_v18 = vmul.f32 %v311_v7, %v263_v9  ;;  %v279_v23 = vmul.f32 %v278_v10, %v1119_v8 }
  0xc9   : > { %273 = vrot.lane.b32.xlu1 %v271_v11, %s909_s28  ;;  %v303_v19 = vrot.slane %v299_v12, 1  ;;  %v304_v20 = vrot.slane %v300_v13, 1  ;;  %v341_v24 = vrot.slane %v337_v15, 2  ;;  %v350_v25 = vmul.f32 %v349_v14, %v1119_v8 }
  0xca   : > { %v351_v26 = vmul.f32 %v349_v14, %v263_v9  ;;  %v1132_v27 = vld [vmem:[#allocation3] sm:$0xff]  ;;  %v342_v29 = vrot.slane %v338_v16, 2  ;;  %v316_v30 = vrot.slane %v312_v17, 1  ;;  %v317_v31 = vrot.slane %v313_v18, 1  ;;  %v265_v32 = vld [vmem:[#allocation3 + $0x8] sm:$0x3] }
  0xcb   : > { %v305_v28 = vsel %vm291_vm3, %v303_v19, %v304_v20  ;;  %v394_v36 = vmul.f32 %v393_v21, %v1132_v27  ;;  %v395_v37 = vmul.f32 %v393_v21, %v265_v32  ;;  %v354_v40 = vrot.slane %v350_v25, 2 }
  0xcc   : > { %306 = vrot.lane.b32.xlu0 %v305_v28, %s909_s28  ;;  %v355_v41 = vrot.slane %v351_v26, 2  ;;  %v287_v42 = vmul.f32 %v286_v22, %v1119_v8  ;;  %v288_v43 = vmul.f32 %v286_v22, %v263_v9  ;;  %v343_v44 = vsel %vm329_vm4, %v341_v24, %v342_v29 }
  0xcd   : > { %281 = vrot.lane.b32.xlu1 %v279_v23, %s910_s8  ;;  %v318_v45 = vsel %vm291_vm3, %v316_v30, %v317_v31  ;;  %v367_v46 = vmul.f32 %v366_v33, %v1132_v27  ;;  %v325_v47 = vmul.f32 %v324_v35, %v1119_v8  ;;  %v407_v48 = vmul.f32 %v406_v38, %v1132_v27 }
  0xce   : > { %v292_v49 = vrot.slane %v287_v42, 1  ;;  %v293_v50 = vrot.slane %v288_v43, 1  ;;  %v326_v51 = vmul.f32 %v324_v35, %v263_v9  ;;  %v398_v52 = vrot.slane %v394_v36, 1 }
  0xcf   : > { %v399_v53 = vrot.slane %v395_v37, 1  ;;  %v330_v54 = vrot.slane %v325_v47, 2  ;;  %v383_v55 = vmul.f32 %v382_v39, %v1132_v27  ;;  %v408_v56 = vmul.f32 %v406_v38, %v265_v32 }
  0xd0   : > { %344 = vrot.lane.b32.xlu0 %v343_v44, %s909_s28  ;;  %v294_v57 = vsel %vm291_vm3, %v292_v49, %v293_v50  ;;  %v331_v58 = vrot.slane %v326_v51, 2  ;;  %v384_v59 = vmul.f32 %v382_v39, %v265_v32  ;;  %v356_v61 = vsel %vm329_vm4, %v354_v40, %v355_v41 }
  0xd1   : > { %319 = vrot.lane.b32.xlu1 %v318_v45, %s910_s8  ;;  %v387_v60 = vrot.slane %v383_v55, 1  ;;  %v375_v0 = vmul.f32 %v374_v34, %v1132_v27  ;;  %v400_v1 = vsel %vm291_vm3, %v398_v52, %v399_v53  ;;  %v411_v2 = vrot.slane %v407_v48, 1 }
  0xd2   : > { %v332_v62 = vsel %vm329_vm4, %v330_v54, %v331_v58  ;;  %v388_v63 = vrot.slane %v384_v59, 1  ;;  %v412_v3 = vrot.slane %v408_v56, 1  ;;  %v267_v6 = vstv %s266_s11 }
  0xd3   : > { %v268_v9 = vmul.f32 %v267_v6, %v1119_v8  ;;  %v362_v20 = vstv %s643_s12 }
  0xd4   : > { %369 = vrot.lane.b32.xlu0 %v367_v46, %s909_s28  ;;  %v389_v4 = vsel %vm291_vm3, %v387_v60, %v388_v63  ;;  %v413_v5 = vsel %vm291_vm3, %v411_v2, %v412_v3  ;;  %v363_v24 = vmul.f32 %v362_v20, %v1132_v27 }
  0xd5   : > { %357 = vrot.lane.b32.xlu1 %v356_v61, %s910_s8 }
  0xd8   : > { %401 = vrot.lane.b32.xlu0 %v400_v1, %s909_s28  ;;  %s778_s28 = scalar_lea.vmem %s777_s23, 256 }
  0xd9   : > { %377 = vrot.lane.b32.xlu1 %v375_v0, %s910_s8  ;;  %p780_p2 = scmp.lt.s32.totalorder %s778_s28, %s772_s7 }
  0xdb   : > { %p781_p12 = por %p780_p2, %p779_p1 }
  0xdd   : > { %414 = vrot.lane.b32.xlu1 %v413_v5, %s910_s8  ;;  %p782_p0 = pnand %p781_p12, %p775_p5 }
 0x13b   : > { %v274_v7 = vpop.permute.xlu1 %273 }
 0x13c   : > { %v276_v10 = vadd.f32 %v274_v7, %v268_v9 }
 0x13e   : > { %v307_v14 = vpop.permute.xlu0 %306 }
 0x13f   : > { %v282_v11 = vpop.permute.xlu1 %281 }
 0x140   : > { %v284_v12 = vadd.f32 %v282_v11, %v276_v10 }
 0x142   : > { %v296_v13 = vadd.f32 %v294_v57, %v284_v12  ;;  %v345_v19 = vpop.permute.xlu0 %344 }
 0x143   : > { %v320_v16 = vpop.permute.xlu1 %319 }
 0x144   : > { %v309_v15 = vadd.f32 %v307_v14, %v296_v13 }
 0x146   : > { %v322_v17 = vadd.f32 %v320_v16, %v309_v15  ;;  %v370_v25 = vpop.permute.xlu0 %369 }
 0x147   : > { %v358_v22 = vpop.permute.xlu1 %357 }
 0x148   : > { %v334_v18 = vadd.f32 %v332_v62, %v322_v17 }
 0x14a   : > { %v347_v21 = vadd.f32 %v345_v19, %v334_v18  ;;  %v402_v31 = vpop.permute.xlu0 %401 }
 0x14b   : > { %v378_v28 = vpop.permute.xlu1 %377 }
 0x14c   : > { %v360_v23 = vadd.f32 %v358_v22, %v347_v21 }
 0x14e   : > { %v364_v8 = vadd.f32 %v363_v24, %v360_v23 }
 0x14f   : > { %v415_v33 = vpop.permute.xlu1 %414 }
 0x150   : > { %v372_v26 = vadd.f32 %v370_v25, %v364_v8 }
 0x152   : > { %v380_v29 = vadd.f32 %v378_v28, %v372_v26 }
 0x154   : > { %v391_v30 = vadd.f32 %v389_v4, %v380_v29 }
 0x156   : > { %v404_v32 = vadd.f32 %v402_v31, %v391_v30 }
 0x158   : > { %v417_v34 = vadd.f32 %v415_v33, %v404_v32 }
 0x15a   : > { %v420_v35 = vsel %vm418_vm5, %v417_v34, 0.0  ;;  %v425_v36 = vmul.f32 %v417_v34, %v417_v34  ;;  %419 = vst.msk [vmem:[%s228_s27] sm:$0xff] %vm418_vm5, %v417_v34 }
 0x15b   : > { %421 = vadd.xlane.f32.xlu0 %v420_v35 }
 0x15c   : > { %v426_v27 = vsel %vm418_vm5, %v425_v36, 0.0 }
 0x15d   : > { %427 = vadd.xlane.f32.xlu1 %v426_v27 }
 0x15e   : > { %785 = shalt.err (!%p782_p0)
}
 0x15f   : > { %s786_s9 = scalar_lea.hbm %s1174_s30, 128  ;;  %s790_s12 = scalar_lea.hbm %s1287_s2, 256 }
 0x160   : > { %p787_p3 = scmp.ne.s32.totalorder %s1174_s30, %s786_s9  ;;  %p791_p6 = scmp.lt.u32.totalorder %s1174_s30, %s1287_s2 }
 0x161   : > { %p792_p13 = scmp.lt.u32.totalorder %s790_s12, %s786_s9  ;;  %p794_p8 = scmp.lt.u32.totalorder %s786_s9, %s1174_s30 }
 0x162   : > { %p788_p7 = pnand %p787_p3, %p1304_p9 }
 0x163   : > { %p793_p4 = por %p792_p13, %p791_p6 }
 0x164   : > { %p789_p10 = pneg %p788_p7 }
 0x165   : > { %p795_p11 = por %p794_p8, %p793_p4 }
 0x167   : > { %p796_p5 = pnand %p795_p11, %p789_p10 }
 0x169   : > { %799 = shalt.err (!%p796_p5)
}
 0x16a   : > { %663 = dma.vmem_to_hbm [thread:$0]  (%p1304_p9), %s455_s5, 128, %s1174_s30, %s431_s26   ;;  %vm423_vm6 = vcmask 7168  }
 0x16b   : > { %s435_s25 = sand.u32 1, %s960_s19   ;;  %s235_s7 = scalar_lea.vmem [#allocation10], %s1093_s10 }
 0x16c   : > { %s467_s6 = sshll.u32 %s235_s7, 4  ;;  %s242_s23 = scalar_lea.vmem [#allocation12], %s1093_s10  ;;  %s1205_s6 = int_to_ptr.vmem [resolvable:$true] %s467_s6 }
 0x16d   : > { %s480_s28 = sshll.u32 %s242_s23, 4  ;;  %s1203_s11 = scalar_lea.hbm %s1288_s3, %s1168_s21  ;;  %s1208_s28 = int_to_ptr.vmem [resolvable:$true] %s480_s28 }
 0x16e   : > { %s1214_s5 = scalar_lea.hbm %s1289_s4, %s1168_s21  ;;  %s1216_s26 = scalar_lea.sflag [#allocation11], %s435_s25 }
 0x16f   : > { %s800_s12 = scalar_lea.vmem %s1205_s6, 128  ;;  %s912_s27 = smov [#allocation10]  }
 0x170   : > { %p801_p1 = scmp.ne.s32.totalorder %s1205_s6, %s800_s12  ;;  %s804_s29 = sshll.u32 %s912_s27, 4  ;;  %s805_s29 = int_to_ptr.vmem [resolvable:$false] %s804_s29 }
 0x171   : > { %s806_s9 = scalar_lea.vmem %s805_s29, 256  ;;  %p807_p0 = scmp.lt.s32.totalorder %s1205_s6, %s805_s29 }
 0x172   : > { %p802_p2 = pnand %p801_p1, %p1304_p9  ;;  %p808_p3 = scmp.lt.s32.totalorder %s806_s9, %s800_s12 }
 0x174   : > { %p803_p12 = pneg %p802_p2  ;;  %p809_p7 = por %p808_p3, %p807_p0 }
 0x176   : > { %p810_p10 = pnand %p809_p7, %p803_p12 }
 0x1e8   : > { %v422_v37 = vpop.xlane.xlu0 %421 }
 0x1e9   : > { %424 = vst.msk [vmem:[%s235_s7] sm:$0xff] %vm423_vm6, %v422_v37 }
 0x1ea   : > { %v428_v38 = vpop.xlane.xlu1 %427 }
 0x1eb   : > { %813 = shalt.err (!%p810_p10)
}
 0x1ec   : > { %s814_s21 = scalar_lea.hbm %s1203_s11, 128  ;;  %s818_s8 = scalar_lea.hbm %s1288_s3, 256 }
 0x1ed   : > { %p815_p6 = scmp.ne.s32.totalorder %s1203_s11, %s814_s21  ;;  %p819_p8 = scmp.lt.u32.totalorder %s1203_s11, %s1288_s3 }
 0x1ee   : > { %p820_p11 = scmp.lt.u32.totalorder %s818_s8, %s814_s21  ;;  %p822_p1 = scmp.lt.u32.totalorder %s814_s21, %s1203_s11 }
 0x1ef   : > { %p816_p13 = pnand %p815_p6, %p1304_p9 }
 0x1f0   : > { %p821_p5 = por %p820_p11, %p819_p8 }
 0x1f1   : > { %p817_p4 = pneg %p816_p13 }
 0x1f2   : > { %p823_p2 = por %p822_p1, %p821_p5 }
 0x1f4   : > { %p824_p12 = pnand %p823_p2, %p817_p4 }
 0x1f6   : > { %827 = shalt.err (!%p824_p12)
}
 0x1f7   : > { %664 = dma.vmem_to_hbm [thread:$0]  (%p1304_p9), %s1205_s6, 128, %s1203_s11, %s1216_s26   ;;  %429 = vst.msk [vmem:[%s242_s23] sm:$0xff] %vm423_vm6, %v428_v38 }
 0x1f8   : > { %s828_s12 = scalar_lea.vmem %s1208_s28, 128  ;;  %s913_s27 = smov [#allocation12]  }
 0x1f9   : > { %p829_p0 = scmp.ne.s32.totalorder %s1208_s28, %s828_s12  ;;  %s832_s29 = sshll.u32 %s913_s27, 4  ;;  %s833_s29 = int_to_ptr.vmem [resolvable:$false] %s832_s29 }
 0x1fa   : > { %s834_s9 = scalar_lea.vmem %s833_s29, 256  ;;  %p835_p10 = scmp.lt.s32.totalorder %s1208_s28, %s833_s29 }
 0x1fb   : > { %p830_p3 = pnand %p829_p0, %p1304_p9  ;;  %p836_p6 = scmp.lt.s32.totalorder %s834_s9, %s828_s12 }
 0x1fd   : > { %p831_p7 = pneg %p830_p3  ;;  %p837_p13 = por %p836_p6, %p835_p10 }
 0x1ff   : > { %p838_p4 = pnand %p837_p13, %p831_p7 }
 0x201   : > { %841 = shalt.err (!%p838_p4)
}
 0x202   : > { %s842_s10 = scalar_lea.hbm %s1214_s5, 128  ;;  %s846_s11 = scalar_lea.hbm %s1289_s4, 256 }
 0x203   : > { %p843_p8 = scmp.ne.s32.totalorder %s1214_s5, %s842_s10  ;;  %p847_p1 = scmp.lt.u32.totalorder %s1214_s5, %s1289_s4 }
 0x204   : > { %p848_p2 = scmp.lt.u32.totalorder %s846_s11, %s842_s10  ;;  %p850_p0 = scmp.lt.u32.totalorder %s842_s10, %s1214_s5 }
 0x205   : > { %p844_p11 = pnand %p843_p8, %p1304_p9 }
 0x206   : > { %p849_p12 = por %p848_p2, %p847_p1 }
 0x207   : > { %p845_p5 = pneg %p844_p11 }
 0x208   : > { %p851_p3 = por %p850_p0, %p849_p12 }
 0x20a   : > { %p852_p7 = pnand %p851_p3, %p845_p5 }
 0x20c   : > { %855 = shalt.err (!%p852_p7)
}
 0x20d   : > { %665 = dma.vmem_to_hbm [thread:$0]  (%p1304_p9), %s1208_s28, 128, %s1214_s5, %s1216_s26  }
 0x20e PF: > { %s492_s7 = sand.u32 1, %s890_s15   ;;  %p1305_p10 = scmp.ne.s32.totalorder %s1294_s22, 0 }
 0x20f   : > { %p1306_p6 = scmp.ge.s32.totalorder %s902_s18, 2  ;;  %s493_s8 = scalar_lea.sflag [#allocation6], %s492_s7 }
 0x211   : > { %p678_p13 = pnand %p1306_p6, %p1305_p10 }
 0x213   : > { %881 = dma.done.wait (!%p678_p13), %s493_s8, 128  }
 0x214   : > { %883 = vsyncadd (!%p678_p13), %s493_s8, 4294967168  ;;  %s501_s19 = sand.u32 1, %s623_s20  }
 0x215   : > { %s502_s30 = scalar_lea.sflag [#allocation11], %s501_s19 }
 0x216   : > { %885 = dma.done.wait (!%p678_p13), %s502_s30, 256  }
 0x217   : > { %887 = vsyncadd (!%p678_p13), %s502_s30, 4294967040  ;;  %p22_p9 = scmp.ge.s32.totalorder %s987_s24, 4   ;;  %s1307_s15 = smov %s894_s16 }
 0x218   : > { %s1308_s16 = smov %s898_s17  ;;  %s1309_s17 = smov %s1027_s13 }
 0x219   : > { %s1310_s18 = smov %s987_s24  ;;  %24 = sbr.rel (!%p22_p9) target bundleno = 8 (0x8), region = 110 }
 0x220   :  { %516 = vsyncpa [#allocation5], 1 }
 0x221   :  { %518 = vsyncpa [#allocation5 + $0x1], 1 }
 0x222   :  { %519 = vsyncpa [#allocation6], 1 }
 0x223   :  { %521 = vsyncpa [#allocation6 + $0x1], 1 }
 0x224   :  { %522 = vsyncpa [#allocation11], 1 }
 0x225   :  { %524 = vsyncpa [#allocation11 + $0x1], 1 }
 0x226   :  { %525 = vsyncpa [#allocation7], 1 }
 0x227   :  { %527 = vsyncpa [#allocation7 + $0x1], 1 }

</bundles_post_ra>
